<compile_context>
chip_gen: v7x
topology: tpu7x:2x2x1
jax: 0.10.0
libtpu: 0.0.40
codegen_flags: <defaults>
</compile_context>

<pallas_src>
import jax
import jax.numpy as jnp
from jax.experimental import pallas as pl
from jax.experimental.pallas import tpu as pltpu


def _forward_math(q, k, v, proj, drop_scale):
    # w1 = x1 @ x2^T : contract both operands on their D axis (no k.T copy).
    w1 = jax.lax.dot_general(
        q, k,
        dimension_numbers=(((2,), (2,)), ((0,), (0,))),
        preferred_element_type=jnp.float32)                    # (B, S, S)

    # w3 = softmax(w1, dim=-1)
    m = jnp.max(w1, axis=-1, keepdims=True)
    e = jnp.exp(w1 - m)
    inv_denom = 1.0 / jnp.sum(e, axis=-1, keepdims=True)       # (B, S, 1)
    w3 = e * inv_denom                                          # (B, S, S)

    # w4 = dropout(w3, p): keep-scales (0 or 1/(1-p)) precomputed in wrapper.
    w4 = w3 if drop_scale is None else w3 * drop_scale

    # w5 = w4 @ x3
    w5 = jax.lax.dot_general(
        w4, v,
        dimension_numbers=(((2,), (1,)), ((0,), (0,))),
        preferred_element_type=jnp.float32)                     # (B, S, D)

    # w6 = (w1 / 2) @ w5 == w1 @ (0.5 * w5): scale the small (S,D) tile.
    w6 = jax.lax.dot_general(
        w1, w5 * 0.5,
        dimension_numbers=(((2,), (1,)), ((0,), (0,))),
        preferred_element_type=jnp.float32)                     # (B, S, D)

    # w7 = w6 @ x4
    return jax.lax.dot_general(
        w6, proj,
        dimension_numbers=(((2,), (1,)), ((0,), (0,))),
        preferred_element_type=jnp.float32)                     # (B, S, E)


def _kernel_dropout(x1_ref, x2_ref, x3_ref, x4_ref, drop_ref, out_ref):
    w7 = _forward_math(x1_ref[...].astype(jnp.float32),
                       x2_ref[...].astype(jnp.float32),
                       x3_ref[...].astype(jnp.float32),
                       x4_ref[...].astype(jnp.float32),
                       drop_ref[...])
    out_ref[...] = w7.astype(out_ref.dtype)


def _kernel_no_dropout(x1_ref, x2_ref, x3_ref, x4_ref, out_ref):
    w7 = _forward_math(x1_ref[...].astype(jnp.float32),
                       x2_ref[...].astype(jnp.float32),
                       x3_ref[...].astype(jnp.float32),
                       x4_ref[...].astype(jnp.float32),
                       None)
    out_ref[...] = w7.astype(out_ref.dtype)


def model_forward(x1, x2, x3, x4, *, dropout_p=0.1, training=True, rng_key=None):
    B, S, D = x1.shape
    E = x4.shape[-1]
    apply_dropout = bool(training) and float(dropout_p) > 0.0

    vmem_spec = pl.BlockSpec(memory_space=pltpu.MemorySpace.VMEM)

    flops = 2 * B * (3 * S * S * D + S * D * E)
    bytes_accessed = 4 * (x1.size + x2.size + x3.size + x4.size + B * S * E)
    if apply_dropout:
        bytes_accessed += 4 * B * S * S
    cost = pl.CostEstimate(flops=flops,
                           transcendentals=B * S * S,
                           bytes_accessed=bytes_accessed)

    out_shape = jax.ShapeDtypeStruct((B, S, E), jnp.float32)

    if not apply_dropout:
        return pl.pallas_call(
            _kernel_no_dropout,
            out_shape=out_shape,
            in_specs=[vmem_spec] * 4,
            out_specs=vmem_spec,
            cost_estimate=cost,
        )(x1, x2, x3, x4)

    if rng_key is None:
        rng_key = jax.random.PRNGKey(0)
    p = float(dropout_p)
    if p >= 1.0:
        drop_scale = jnp.zeros((B, S, S), dtype=jnp.float32)
    else:
        keep = jax.random.bernoulli(rng_key, 1.0 - p, (B, S, S))
        drop_scale = keep.astype(jnp.float32) * (1.0 / (1.0 - p))

    return pl.pallas_call(
        _kernel_dropout,
        out_shape=out_shape,
        in_specs=[vmem_spec] * 5,
        out_specs=vmem_spec,
        cost_estimate=cost,
    )(x1, x2, x3, x4, drop_scale)


if __name__ == "__main__":
    B, S, D, E = 2, 8, 32, 16
    key = jax.random.PRNGKey(0)
    k1, k2, k3, k4, kdrop = jax.random.split(key, 5)
    x1 = jax.random.normal(k1, (B, S, D), dtype=jnp.float32)
    x2 = jax.random.normal(k2, (B, S, D), dtype=jnp.float32)
    x3 = jax.random.normal(k3, (B, S, D), dtype=jnp.float32)
    x4 = jax.random.normal(k4, (B, D, E), dtype=jnp.float32)

    # Training path (dropout active): shape / finiteness checks.
    out = model_forward(x1, x2, x3, x4, dropout_p=0.1, training=True,
                        rng_key=kdrop)
    out = jax.block_until_ready(out)
    assert out.shape == (B, S, E)
    assert bool(jnp.all(jnp.isfinite(out)))

    # Deterministic path (p = 0): validate against a pure-JAX reference.
    out_det = jax.block_until_ready(
        model_forward(x1, x2, x3, x4, dropout_p=0.0))
    w1 = jnp.einsum("bsd,btd->bst", x1, x2)
    w3 = jax.nn.softmax(w1, axis=-1)
    w5 = jnp.einsum("bst,btd->bsd", w3, x3)
    w6 = jnp.einsum("bst,btd->bsd", w1 * 0.5, w5)
    ref = jnp.einsum("bsd,bde->bse", w6, x4)
    assert jnp.allclose(out_det, ref, atol=2e-4, rtol=2e-4), \
        float(jnp.max(jnp.abs(out_det - ref)))

    print("KERNEL_OK")
</pallas_src>

<mosaic_0001>
module attributes {stable_mosaic.version = 11 : i64} {
  func.func @_kernel_dropout(%arg0: memref<2x8x32xf32, #tpu.memory_space<vmem>>, %arg1: memref<2x8x32xf32, #tpu.memory_space<vmem>>, %arg2: memref<2x8x32xf32, #tpu.memory_space<vmem>>, %arg3: memref<2x32x16xf32, #tpu.memory_space<vmem>>, %arg4: memref<2x8x8xf32, #tpu.memory_space<vmem>>, %arg5: memref<2x8x16xf32, #tpu.memory_space<vmem>>) attributes {dimension_semantics = [], scalar_prefetch = 0 : i64, scratch_operands = 0 : i64, tpu.core_type = #tpu.core_type<tc>} {
    %c0 = arith.constant 0 : index
    %c0_0 = arith.constant 0 : index
    %c0_1 = arith.constant 0 : index
    %0 = vector.load %arg0[%c0, %c0_0, %c0_1] : memref<2x8x32xf32, #tpu.memory_space<vmem>>, vector<2x8x32xf32>
    %c0_2 = arith.constant 0 : index
    %c0_3 = arith.constant 0 : index
    %c0_4 = arith.constant 0 : index
    %1 = vector.load %arg1[%c0_2, %c0_3, %c0_4] : memref<2x8x32xf32, #tpu.memory_space<vmem>>, vector<2x8x32xf32>
    %c0_5 = arith.constant 0 : index
    %c0_6 = arith.constant 0 : index
    %c0_7 = arith.constant 0 : index
    %2 = vector.load %arg2[%c0_5, %c0_6, %c0_7] : memref<2x8x32xf32, #tpu.memory_space<vmem>>, vector<2x8x32xf32>
    %c0_8 = arith.constant 0 : index
    %c0_9 = arith.constant 0 : index
    %c0_10 = arith.constant 0 : index
    %3 = vector.load %arg3[%c0_8, %c0_9, %c0_10] : memref<2x32x16xf32, #tpu.memory_space<vmem>>, vector<2x32x16xf32>
    %c0_11 = arith.constant 0 : index
    %c0_12 = arith.constant 0 : index
    %c0_13 = arith.constant 0 : index
    %4 = vector.load %arg4[%c0_11, %c0_12, %c0_13] : memref<2x8x8xf32, #tpu.memory_space<vmem>>, vector<2x8x8xf32>
    %cst = arith.constant dense<0.000000e+00> : vector<2x8x8xf32>
    %5 = tpu.matmul %0, %1, %cst {dimension_numbers = #tpu.dot_dimension_numbers<[2], [2], [1], [1], [0, 0, 0, 1, 1, 1], [0], [0]>} : vector<2x8x32xf32>, vector<2x8x32xf32>, vector<2x8x8xf32> -> vector<2x8x8xf32>
    %cst_14 = arith.constant dense<0xFF800000> : vector<2x8xf32>
    %6 = vector.multi_reduction <maximumf>, %5, %cst_14 [2] : vector<2x8x8xf32> to vector<2x8xf32>
    %7 = vector.shape_cast %6 : vector<2x8xf32> to vector<2x8x1xf32>
    %8 = vector.broadcast %7 : vector<2x8x1xf32> to vector<2x8x8xf32>
    %9 = arith.subf %5, %8 : vector<2x8x8xf32>
    %10 = math.exp %9 : vector<2x8x8xf32>
    %cst_15 = arith.constant dense<0.000000e+00> : vector<2x8xf32>
    %11 = vector.multi_reduction <add>, %10, %cst_15 [2] : vector<2x8x8xf32> to vector<2x8xf32>
    %12 = vector.shape_cast %11 : vector<2x8xf32> to vector<2x8x1xf32>
    %cst_16 = arith.constant 1.000000e+00 : f32
    %13 = vector.broadcast %cst_16 : f32 to vector<2x8x1xf32>
    %14 = arith.divf %13, %12 : vector<2x8x1xf32>
    %15 = vector.broadcast %14 : vector<2x8x1xf32> to vector<2x8x8xf32>
    %16 = arith.mulf %10, %15 : vector<2x8x8xf32>
    %17 = arith.mulf %16, %4 : vector<2x8x8xf32>
    %cst_17 = arith.constant dense<0.000000e+00> : vector<2x8x32xf32>
    %18 = tpu.matmul %17, %2, %cst_17 {dimension_numbers = #tpu.dot_dimension_numbers<[2], [1], [1], [2], [0, 0, 0, 1, 1, 2], [0], [0]>} : vector<2x8x8xf32>, vector<2x8x32xf32>, vector<2x8x32xf32> -> vector<2x8x32xf32>
    %cst_18 = arith.constant 5.000000e-01 : f32
    %19 = vector.broadcast %cst_18 : f32 to vector<2x8x32xf32>
    %20 = arith.mulf %18, %19 : vector<2x8x32xf32>
    %cst_19 = arith.constant dense<0.000000e+00> : vector<2x8x32xf32>
    %21 = tpu.matmul %5, %20, %cst_19 {dimension_numbers = #tpu.dot_dimension_numbers<[2], [1], [1], [2], [0, 0, 0, 1, 1, 2], [0], [0]>} : vector<2x8x8xf32>, vector<2x8x32xf32>, vector<2x8x32xf32> -> vector<2x8x32xf32>
    %cst_20 = arith.constant dense<0.000000e+00> : vector<2x8x16xf32>
    %22 = tpu.matmul %21, %3, %cst_20 {dimension_numbers = #tpu.dot_dimension_numbers<[2], [1], [1], [2], [0, 0, 0, 1, 1, 2], [0], [0]>} : vector<2x8x32xf32>, vector<2x32x16xf32>, vector<2x8x16xf32> -> vector<2x8x16xf32>
    %c0_21 = arith.constant 0 : index
    %c0_22 = arith.constant 0 : index
    %c0_23 = arith.constant 0 : index
    %23 = vector.load %arg5[%c0_21, %c0_22, %c0_23] : memref<2x8x16xf32, #tpu.memory_space<vmem>>, vector<2x8x16xf32>
    tpu.vector_store %arg5[%c0_21, %c0_22, %c0_23], %22 {strides = array<i32>} : memref<2x8x16xf32, #tpu.memory_space<vmem>>, vector<2x8x16xf32>,
    return
  }
}

</mosaic_0001>

<bundles_post_ra>
// kernel: tpu_custom_call.1
= control target key start
LH: loop header
LB: loop body
LE: loop exit
PB: predicated region body
PF: predicated region fallthrough
CT: control target
= control target key end

     0   :  { %vm37_vm0 = vcmask 261120   ;;  %v810_v2 = vmov 0.0   ;;  %vm811_vm1 = vmmov 0   ;;  %s947_s0 = inlined_call_operand.vmem [shape: f32[2,8,32], index: 0, kind: input, shape index: {}]   ;;  %s948_s1 = inlined_call_operand.vmem [shape: f32[2,8,32], index: 1, kind: input, shape index: {}]   ;;  %s949_s2 = inlined_call_operand.vmem [shape: f32[2,8,32], index: 2, kind: input, shape index: {}]   ;;  %s950_s3 = inlined_call_operand.vmem [shape: f32[2,32,16], index: 3, kind: input, shape index: {}]   ;;  %s951_s4 = inlined_call_operand.vmem [shape: f32[2,8,8], index: 4, kind: input, shape index: {}]   ;;  %s952_s5 = inlined_call_operand.hbm [shape: f32[2,8,16], index: 5, kind: output, shape index: {}]  }
   0x1   :  { %v23_v0 = vld [vmem:[%s948_s1] sm:$0xff]  ;;  %v24_v1 = vld [vmem:[%s948_s1 + $0x8] sm:$0xff]  ;;  %708 = vmatprep.subr.mxu0 %v810_v2  ;;  %710 = vmatprep.mubr.msk.f32.mxu0 %vm811_vm1, %v810_v2 }
   0x2   :  { %10 = vsyncpa [#allocation3], 0  ;;  %709 = vmatpush3.xpose.msk.msra.mxu0 %vm37_vm0, %v23_v0  ;;  %713 = vmatprep.subr.mxu1 %v810_v2  ;;  %v21_v3 = vld [vmem:[%s947_s0] sm:$0xff]  ;;  %v22_v4 = vld [vmem:[%s947_s0 + $0x8] sm:$0xff]  ;;  %vm190_vm2 = vcmask 64512   ;;  %v812_v44 = vmov 0.0|0.0  }
   0x3   :  { %714 = vmatpush3.xpose.msk.msra.mxu1 %vm37_vm0, %v24_v1  ;;  %715 = vmatprep.mubr.msk.f32.mxu1 %vm811_vm1, %v810_v2  ;;  %v25_v21 = vld [vmem:[%s949_s2] sm:$0xff]  ;;  %v26_v22 = vld [vmem:[%s949_s2 + $0x8] sm:$0xff]  ;;  %v29_v39 = vld [vmem:[%s950_s3 + $0x10] sm:$0xff]  ;;  %vm657_vm3 = vcmask 130048   ;;  %s813_s21 = smov [#allocation2]  }
   0x4   :  { %718 = vmatprep.subr.mxu0 %v810_v2  ;;  %723 = vmatprep.subr.mxu1 %v810_v2  ;;  %v35_v26 = vld [vmem:[%s951_s4] sm:$0xff]  ;;  %v36_v30 = vld [vmem:[%s951_s4 + $0x8] sm:$0xff]  ;;  %v30_v40 = vld [vmem:[%s950_s3 + $0x18] sm:$0xff]  ;;  %s665_s22 = sshll.u32 %s813_s21, 4  ;;  %s666_s22 = int_to_ptr.vmem [resolvable:$true] %s665_s22 }
   0x5   :  { %711 = vmatmul.mubr.msk.f32.vlgmr.msra.gmra.mrb[0].mxu0 %vm37_vm0, %v21_v3  ;;  %v27_v33 = vld [vmem:[%s950_s3] sm:$0xff]  ;;  %v28_v34 = vld [vmem:[%s950_s3 + $0x8] sm:$0xff]  ;;  %v764_v47 = vpack.c.bf16 %v30_v40, %v29_v39  ;;  %v33_v49 = vld [vmem:[%s950_s3 + $0x30] sm:$0xff]  ;;  %p791_p1 = scmp.lt.s32.totalorder %s666_s22, %s666_s22 }
   0x6   :  { %716 = vmatmul.mubr.msk.f32.vlgmr.msra.gmra.mrb[0].mxu1 %vm37_vm0, %v22_v4  ;;  %720 = vmatprep.mubr.msk.f32.mxu0 %vm811_vm1, %v810_v2  ;;  %v761_v38 = vpack.c.bf16 %v28_v34, %v27_v33  ;;  %v31_v41 = vld [vmem:[%s950_s3 + $0x20] sm:$0xff]  ;;  %v32_v42 = vld [vmem:[%s950_s3 + $0x28] sm:$0xff]  ;;  %v34_v50 = vld [vmem:[%s950_s3 + $0x38] sm:$0xff]  ;;  %s786_s3 = scalar_lea.vmem %s666_s22, 256 }
   0x7   :  { %725 = vmatprep.mubr.msk.f32.mxu1 %vm811_vm1, %v810_v2  ;;  %719 = vmatpush3.msra.mxu0 %v25_v21  ;;  %v767_v48 = vpack.c.bf16 %v32_v42, %v31_v41  ;;  %v770_v51 = vpack.c.bf16 %v34_v50, %v33_v49  ;;  %p787_p0 = scmp.ne.s32.totalorder %s666_s22, %s786_s3  ;;  %p792_p2 = scmp.lt.s32.totalorder %s786_s3, %s786_s3 }
   0x8   :  { %728 = vmatprep.subr.mxu0 %v810_v2  ;;  %724 = vmatpush3.msra.mxu1 %v26_v22 }
   0x9   :  { %733 = vmatprep.subr.mxu1 %v810_v2  ;;  %p793_p3 = por %p792_p2, %p791_p1 }
   0xb   :  { %p794_p4 = pnand %p793_p3, %p787_p0 }
  0xd8   :  { %v110_v5 = vpop.f32.mrb[0].mxu0 }
  0xd9   :  { %v712_v6 = vpop.f32.mrb[1].mxu0  ;;  %v191_v7 = vsel %vm190_vm2, %v110_v5, -inf  ;;  %v875_v8 = vpop.f32.mrb[0].mxu1 }
  0xda   :  { %192 = vmax.xlane.f32.xlu0 %v191_v7  ;;  %v717_v9 = vpop.f32.mrb[1].mxu1  ;;  %v194_v10 = vsel %vm190_vm2, %v875_v8, -inf }
  0xde   :  { %195 = vmax.xlane.f32.xlu0 %v194_v10 }
 0x167   :  { %v193_v11 = vpop.xlane.xlu0 %192 }
 0x168   :  { %v197_v12 = vsub.f32 %v110_v5, %v193_v11 }
 0x16a   :  { %v199_v13 = vmul.f32 1.442695, %v197_v12 }
 0x16b   :  { %v196_v14 = vpop.xlane.xlu0 %195 }
 0x16c   :  { %778 = vpow2.f32 %v199_v13  ;;  %v198_v15 = vsub.f32 %v875_v8, %v196_v14 }
 0x16e   :  { %v201_v16 = vmul.f32 1.442695, %v198_v15 }
 0x170   :  { %780 = vpow2.f32 %v201_v16 }
 0x176   :  { %v779_v17 = vpop.eup %778 }
 0x177   :  { %v203_v18 = vsel %vm190_vm2, %v779_v17, 0.0 }
 0x178   :  { %204 = vadd.xlane.f32.xlu1 %v203_v18 }
 0x17a   :  { %v781_v19 = vpop.eup %780 }
 0x17b   :  { %v206_v20 = vsel %vm190_vm2, %v781_v19, 0.0 }
 0x17c   :  { %207 = vadd.xlane.f32.xlu1 %v206_v20 }
 0x205   :  { %v205_v23 = vpop.xlane.xlu1 %204 }
 0x206   :  { %782 = vrcp.f32 %v205_v23 }
 0x209   :  { %v208_v24 = vpop.xlane.xlu1 %207 }
 0x20a   :  { %784 = vrcp.f32 %v208_v24 }
 0x210   :  { %v783_v25 = vpop.eup %782 }
 0x211   :  { %v213_v27 = vmul.f32 %v783_v25, %v779_v17 }
 0x213   :  { %v215_v28 = vmul.f32 %v213_v27, %v35_v26 }
 0x214   :  { %v785_v29 = vpop.eup %784 }
 0x215   :  { %v214_v31 = vmul.f32 %v785_v29, %v781_v19  ;;  %721 = vmatmul.mubr.msk.f32.vlgmr.msra.gmra.mrb[2].mxu0 %vm190_vm2, %v215_v28 }
 0x216   :  { %730 = vmatprep.mubr.msk.f32.mxu0 %vm811_vm1, %v810_v2 }
 0x217   :  { %v216_v32 = vmul.f32 %v214_v31, %v36_v30 }
 0x219   :  { %726 = vmatmul.mubr.msk.f32.vlgmr.msra.gmra.mrb[2].mxu1 %vm190_vm2, %v216_v32 }
 0x21a   :  { %735 = vmatprep.mubr.msk.f32.mxu1 %vm811_vm1, %v810_v2 }
 0x2e8   :  { %v286_v35 = vpop.f32.mrb[2].mxu0 }
 0x2e9   :  { %v363_v36 = vmul.f32 0.5, %v286_v35  ;;  %v722_v37 = vpop.f32.mrb[3].mxu0 }
 0x2eb   :  { %729 = vmatpush3.msra.mxu0 %v363_v36 }
 0x2ec   :  { %v359_v43 = vpop.f32.mrb[2].mxu1  ;;  %731 = vmatmul.mubr.msk.f32.vlgmr.msra.gmra.mrb[4].mxu0 %vm190_vm2, %v110_v5  ;;  %760 = vmatprep.subr.bf16.mxu0 %v812_v44 }
 0x2ed   :  { %v364_v45 = vmul.f32 0.5, %v359_v43  ;;  %v727_v46 = vpop.f32.mrb[3].mxu1  ;;  %762 = vmatpush3.bf16.msra.mxu0 %v761_v38  ;;  %746 = vmatprep.mubr.msk.f32.mxu0 %vm811_vm1, %v810_v2 }
 0x2ee   :  { %763 = vmatprep.subr.bf16.mxu0 %v812_v44 }
 0x2ef   :  { %734 = vmatpush3.msra.mxu1 %v364_v45 }
 0x2f0   :  { %736 = vmatmul.mubr.msk.f32.vlgmr.msra.gmra.mrb[4].mxu1 %vm190_vm2, %v875_v8  ;;  %766 = vmatprep.subr.bf16.mxu1 %v812_v44 }
 0x2f1   :  { %765 = vmatpush3.bf16.msra.mxu0 %v764_v47  ;;  %768 = vmatpush3.bf16.msra.mxu1 %v767_v48 }
 0x2f2   :  { %769 = vmatprep.subr.bf16.mxu1 %v812_v44  ;;  %757 = vmatprep.mubr.msk.f32.mxu1 %vm811_vm1, %v810_v2 }
 0x2f5   :  { %771 = vmatpush3.bf16.msra.mxu1 %v770_v51 }
 0x3bf   :  { %v434_v52 = vpop.f32.mrb[4].mxu0 }
 0x3c0   :  { %v732_v53 = vpop.f32.mrb[5].mxu0  ;;  %747 = vmatmul.mubr.msk.f32.vlgmr.msra.gmra.mrb[6].mxu0 %vm37_vm0, %v434_v52 }
 0x3c3   :  { %v507_v54 = vpop.f32.mrb[4].mxu1 }
 0x3c4   :  { %v737_v55 = vpop.f32.mrb[5].mxu1  ;;  %758 = vmatmul.mubr.msk.f32.vlgmr.msra.gmra.mrb[6].mxu1 %vm37_vm0, %v507_v54 }
 0x493   :  { %v580_v56 = vpop.f32.mrb[6].mxu0 }
 0x494   :  { %658 = vst.msk [vmem:[#allocation2] sm:$0xff] %vm657_vm3, %v580_v56  ;;  %v748_v57 = vpop.f32.mrb[7].mxu0 }
 0x497   :  { %v653_v58 = vpop.f32.mrb[6].mxu1 }
 0x498   :  { %659 = vst.msk [vmem:[#allocation2 + $0x8] sm:$0xff] %vm657_vm3, %v653_v58  ;;  %v759_v59 = vpop.f32.mrb[7].mxu1 }
 0x499   :  { %797 = shalt.err (!%p794_p4)
}
 0x49a   :  { %s798_s24 = scalar_lea.hbm %s952_s5, 256 }
 0x49b   :  { %p799_p5 = scmp.ne.s32.totalorder %s952_s5, %s798_s24  ;;  %p802_p6 = scmp.lt.u32.totalorder %s798_s24, %s952_s5 }
 0x49d   :  { %p804_p7 = pnand %p802_p6, %p799_p5 }
 0x49f   :  { %807 = shalt.err (!%p804_p7)
}
 0x4a0   :  { %s814_s28 = smov 128   ;;  %s815_s29 = smov 8  }
 0x4a1   :  { %671 = dma.vmem_to_hbm [thread:$0]  %s666_s22, 256, %s952_s5, [#allocation3], %s814_s28, %s814_s28, %s815_s29  }
 0x4a2   :  { %808 = dma.done.wait [#allocation3], 256  }
 0x4a3   :  { %809 = vsyncadd [#allocation3], 4294967040 }
 0x4a4   :  { %675 = vsyncpa [#allocation3], 1 }

</bundles_post_ra>
